<compile_context>
chip_gen: v7x
topology: tpu7x:2x2x1
jax: 0.10.0
libtpu: 0.0.40
codegen_flags: <defaults>
</compile_context>

<pallas_src>
import functools

import jax
import jax.numpy as jnp
from jax.experimental import pallas as pl
from jax.experimental.pallas import tpu as pltpu


def _round_up(x, m):
    return ((x + m - 1) // m) * m


def _chip_is_v6_or_newer():
    """True on chips with a 256-wide MXU and bf16 VPU/EUP (v6e, v7x, ...)."""
    try:
        kind = jax.devices()[0].device_kind.lower()
    except Exception:
        return False
    return not any(old in kind for old in ("v2", "v3", "v4", "v5"))


def _vmem_capacity_bytes():
    try:
        return int(pltpu.get_tpu_info().vmem_capacity_bytes)
    except Exception:
        return 64 << 20        # conservative default: v7x per-TensorCore VMEM


# ----------------------------- Pallas kernel ------------------------------- #

def _discount_mlp_kernel(x_ref, w1_ref, b1_ref, w2_ref, b2_ref, w3_ref, b3_ref,
                         o_ref, *, bf16_epilogue, lane_dense_out):
    """logits = Linear3(ELU(Linear2(ELU(Linear1(x))))) for one batch tile."""

    def elu(v):  # negative branch uses exp(min(v,0))-1 so the untaken side never overflows
        return jnp.where(v > 0, v, jnp.exp(jnp.minimum(v, 0)) - 1)

    # f32 tile straight from HBM; the bf16 pack for the MXU happens here on the
    # VPU (hidden under the MXU) instead of as a separate wrapper-side XLA pass.
    x = x_ref[...].astype(jnp.bfloat16)                             # (TB, L)

    # Layer 1: MXU (bf16 operands, f32 accumulation) + bias + ELU.
    h = jnp.dot(x, w1_ref[...], preferred_element_type=jnp.float32) + b1_ref[...]
    if bf16_epilogue:      # v6e/v7x: bf16 VALU/EUP -> half the elementwise vreg work
        h = elu(h.astype(jnp.bfloat16))
    else:                  # v5e: no bf16 VPU/EUP -> keep the epilogue in f32
        h = elu(h).astype(jnp.bfloat16)

    # Layer 2: MXU + bias + ELU (same epilogue policy).
    h = jnp.dot(h, w2_ref[...], preferred_element_type=jnp.float32) + b2_ref[...]
    h = elu(h.astype(jnp.bfloat16)) if bf16_epilogue else elu(h)

    # Layer 3: N=1 projection on the VPU/XLU (multiply + cross-lane sum); a
    # single output column is not worth an MXU push.
    prod = h.astype(jnp.float32) * w3_ref[...]                      # (TB, H) f32
    if lane_dense_out:
        # Lane-dense (TB,) row: unmasked vector stores instead of TB/8 masked
        # stores for a (TB, 1) column; the column->row relayout rides the XLU.
        o_ref[...] = (jnp.sum(prod, axis=-1) + b3_ref[0, 0]).astype(o_ref.dtype)
    else:
        o_ref[...] = (jnp.sum(prod, axis=-1, keepdims=True)
                      + b3_ref[...]).astype(o_ref.dtype)


# ------------------------------ wrapper ------------------------------------- #

def _choose_tile_b(batch, tile_b):
    """Batch tile: cover small batches with a single tile; for large batches
    keep TB a multiple of 128 (lane-aligned output blocks) and prefer an even
    tile count so v7x's two TensorCores both stay busy."""
    if batch <= tile_b:
        return _round_up(batch, 8)
    n = pl.cdiv(batch, tile_b)
    if n % 2:
        n += 1
    return max(128, _round_up(pl.cdiv(batch, n), 128))


def discount_predictor_forward(latent_state, params, *, tile_b=1024):
    """Returns Bernoulli logits, shape (B, 1).

    # TODO(synk): torch.distributions.Bernoulli(logits=...) has no Pallas
    # equivalent; the kernel returns the logits that fully parameterize it.
    """
    w1, b1, w2, b2, w3, b3 = (params["w1"], params["b1"], params["w2"],
                              params["b2"], params["w3"], params["b3"])
    B, L = latent_state.shape
    L_pad, H_pad = w1.shape

    x = latent_state                      # stays f32; bf16 cast happens in-kernel
    if L != L_pad:                        # feature padding (only if latent % 8 != 0)
        x = jnp.pad(x, ((0, 0), (0, L_pad - L)))

    TB = _choose_tile_b(B, tile_b)

    # Per-TensorCore VMEM budget (v7x: 64 MiB, v5e/v6e: 128 MiB) with headroom;
    # shrink the batch tile if the footprint would not fit.
    bytes_weights = (w1.size * w1.dtype.itemsize + w2.size * w2.dtype.itemsize
                     + (b1.size + b2.size + w3.size + b3.size) * 4)

    def footprint(tb):
        io = 2 * (tb * L_pad * 4 + tb * 4)          # double-buffered x tile + out row
        act = 4 * tb * H_pad * 4                    # (TB, H) activation temporaries
        return bytes_weights + io + act

    vmem_budget = int(_vmem_capacity_bytes() * 0.8)
    while TB > 128 and footprint(TB) > vmem_budget:
        TB = max(128, _round_up(TB // 2, 128))
    vmem_limit = int(min(vmem_budget, max(32 << 20, 2 * footprint(TB))))

    B_pad = _round_up(B, TB)
    if B_pad != B:                        # zero-pad: ELU(0)=0, padded rows sliced off below
        x = jnp.pad(x, ((0, B_pad - B), (0, 0)))
    num_tiles = B_pad // TB

    cost = pl.CostEstimate(
        flops=2 * B_pad * (L_pad * H_pad + H_pad * H_pad + H_pad),
        transcendentals=2 * B_pad * H_pad,
        bytes_accessed=(x.size * 4 + w1.size * 2 + w2.size * 2
                        + (b1.size + b2.size + w3.size + b3.size) * 4 + B_pad * 4),
    )
    in_specs = [
        pl.BlockSpec((TB, L_pad), lambda i: (i, 0)),        # x: tiled over batch
        pl.BlockSpec((L_pad, H_pad), lambda i: (0, 0)),     # weights: VMEM-resident
        pl.BlockSpec((1, H_pad), lambda i: (0, 0)),
        pl.BlockSpec((H_pad, H_pad), lambda i: (0, 0)),
        pl.BlockSpec((1, H_pad), lambda i: (0, 0)),
        pl.BlockSpec((1, H_pad), lambda i: (0, 0)),
        pl.BlockSpec((1, 1), lambda i: (0, 0)),
    ]
    compiler_params = pltpu.CompilerParams(
        dimension_semantics=("parallel",), vmem_limit_bytes=vmem_limit)
    bf16_epi = _chip_is_v6_or_newer()

    def run(lane_dense):
        if lane_dense:
            out_shape = jax.ShapeDtypeStruct((B_pad,), jnp.float32)
            out_spec = pl.BlockSpec((TB,), lambda i: (i,))
        else:
            out_shape = jax.ShapeDtypeStruct((B_pad, 1), jnp.float32)
            out_spec = pl.BlockSpec((TB, 1), lambda i: (i, 0))
        out = pl.pallas_call(
            functools.partial(_discount_mlp_kernel,
                              bf16_epilogue=bf16_epi, lane_dense_out=lane_dense),
            out_shape=out_shape,
            grid=(num_tiles,),
            in_specs=in_specs,
            out_specs=out_spec,
            compiler_params=compiler_params,
            cost_estimate=cost,
        )(x, w1, b1, w2, b2, w3, b3)
        return out.reshape(-1)[:B].reshape(B, 1)

    try:
        return run(lane_dense=True)
    except Exception:
        # Safety net: if this Mosaic version cannot lower the column->row
        # relayout for the lane-dense store, fall back to the (TB, 1) layout
        # that is known to compile.
        return run(lane_dense=False)


def discount_predictor_step(latent_state, params):
    """Mirrors DiscountPredictor.step: (Bernoulli.mean >= 0.5) as float.
    sigmoid(logit) >= 0.5  <=>  logit >= 0, so the sigmoid is skipped."""
    logits = discount_predictor_forward(latent_state, params)
    return (logits >= 0.0).astype(jnp.float32)


# ------------------------ deterministic parameter init --------------------- #

def _orthogonal(key, out_features, in_features):
    """Orthogonal init matching torch.nn.init.orthogonal_ (gain=1) for a
    (out_features, in_features) Linear weight."""
    rows, cols = out_features, in_features
    flat = jax.random.normal(key, (max(rows, cols), min(rows, cols)),
                             dtype=jnp.float32)
    q, r = jnp.linalg.qr(flat)
    q = q * jnp.sign(jnp.diag(r))[None, :]
    if rows < cols:
        q = q.T
    return q[:rows, :cols]


def init_discount_predictor_params(key, stoch_size, deter_size, hidden_size=400):
    """Weights stored (in, out) for x @ W on the MXU.  hidden is padded to the
    MXU width (128 on v5e, 256 on v6e/v7x) and latent to a multiple of 8;
    padded units have zero weights + zero bias, ELU(0)=0, and contribute zero
    to the final projection.  w1/w2 are stored in bfloat16 once so forward
    calls don't pay a per-call cast pass."""
    latent_dim = stoch_size + deter_size
    L_pad = _round_up(latent_dim, 8)
    H_pad = _round_up(hidden_size, 256 if _chip_is_v6_or_newer() else 128)
    k1, k2, k3 = jax.random.split(key, 3)

    w1 = _orthogonal(k1, hidden_size, latent_dim).T            # (L, H)
    w2 = _orthogonal(k2, hidden_size, hidden_size).T           # (H, H)
    w3 = _orthogonal(k3, 1, hidden_size)                       # (1, H) row vector

    w1 = jnp.pad(w1, ((0, L_pad - latent_dim), (0, H_pad - hidden_size)))
    w2 = jnp.pad(w2, ((0, H_pad - hidden_size), (0, H_pad - hidden_size)))
    w3 = jnp.pad(w3, ((0, 0), (0, H_pad - hidden_size)))

    return {
        "w1": w1.astype(jnp.bfloat16), "b1": jnp.zeros((1, H_pad), jnp.float32),
        "w2": w2.astype(jnp.bfloat16), "b2": jnp.zeros((1, H_pad), jnp.float32),
        "w3": w3, "b3": jnp.zeros((1, 1), jnp.float32),
    }


# ------------------------------ reference (JAX) ----------------------------- #

def _reference_forward(latent_state, params):
    """Pure-JAX reference mirroring the kernel's precision recipe (bf16 MXU
    operands, f32 accumulation, chip-matched ELU precision, f32 projection)."""
    bf16_epi = _chip_is_v6_or_newer()
    elu = lambda v: jnp.where(v > 0, v, jnp.exp(jnp.minimum(v, 0)) - 1)
    L = latent_state.shape[1]
    L_pad = params["w1"].shape[0]
    x = latent_state
    if L != L_pad:
        x = jnp.pad(x, ((0, 0), (0, L_pad - L)))
    x = x.astype(jnp.bfloat16)
    h = jnp.dot(x, params["w1"], preferred_element_type=jnp.float32) + params["b1"]
    h = elu(h.astype(jnp.bfloat16)) if bf16_epi else elu(h).astype(jnp.bfloat16)
    h = jnp.dot(h, params["w2"], preferred_element_type=jnp.float32) + params["b2"]
    h = elu(h.astype(jnp.bfloat16)) if bf16_epi else elu(h)
    return (jnp.sum(h.astype(jnp.float32) * params["w3"], axis=-1, keepdims=True)
            + params["b3"])


# ---------------------------------- main ------------------------------------ #

if __name__ == "__main__":
    # Small, forward-consistent shapes: latent = stoch + deter.
    batch = 8
    stoch_size, deter_size = 8, 24     # latent_dim = 32
    hidden_size = 32                   # padded to the MXU width inside init

    key = jax.random.PRNGKey(0)
    k_params, k_x = jax.random.split(key)

    params = init_discount_predictor_params(k_params, stoch_size, deter_size,
                                            hidden_size=hidden_size)
    latent_state = jax.random.normal(
        k_x, (batch, stoch_size + deter_size), dtype=jnp.float32)

    logits = jax.block_until_ready(discount_predictor_forward(latent_state, params))
    assert logits.shape == (batch, 1)

    # sanity check vs a pure-JAX reference using the same precision recipe
    ref = _reference_forward(latent_state, params)
    assert jnp.allclose(logits, ref, atol=1e-2, rtol=1e-2), "mismatch vs reference"

    # step(): equivalent to (Bernoulli(logits).mean >= 0.5).float()
    flags = jax.block_until_ready(discount_predictor_step(latent_state, params))
    assert flags.shape == (batch, 1)
    assert bool(jnp.all((flags == 0.0) | (flags == 1.0)))

    print("KERNEL_OK")
</pallas_src>

<mosaic_0001>
module attributes {stable_mosaic.version = 11 : i64} {
  func.func @_discount_mlp_kernel(%arg0: i32, %arg1: memref<8x32xf32, #tpu.memory_space<vmem>>, %arg2: memref<32x256xbf16, #tpu.memory_space<vmem>>, %arg3: memref<1x256xf32, #tpu.memory_space<vmem>>, %arg4: memref<256x256xbf16, #tpu.memory_space<vmem>>, %arg5: memref<1x256xf32, #tpu.memory_space<vmem>>, %arg6: memref<1x256xf32, #tpu.memory_space<vmem>>, %arg7: memref<1x1xf32, #tpu.memory_space<vmem>>, %arg8: memref<8x1xf32, #tpu.memory_space<vmem>>) attributes {dimension_semantics = [#tpu.dimension_semantics<parallel>], iteration_bounds = array<i64: 1>, scalar_prefetch = 0 : i64, scratch_operands = 0 : i64, tpu.core_type = #tpu.core_type<tc>, window_params = [{transform_indices = @transform_0, window_bounds = array<i64: 8, 32>}, {pipeline_mode = #tpu.pipeline_mode<synchronous>, transform_indices = @transform_1, window_bounds = array<i64: 32, 256>}, {pipeline_mode = #tpu.pipeline_mode<synchronous>, transform_indices = @transform_2, window_bounds = array<i64: 1, 256>}, {pipeline_mode = #tpu.pipeline_mode<synchronous>, transform_indices = @transform_3, window_bounds = array<i64: 256, 256>}, {pipeline_mode = #tpu.pipeline_mode<synchronous>, transform_indices = @transform_4, window_bounds = array<i64: 1, 256>}, {pipeline_mode = #tpu.pipeline_mode<synchronous>, transform_indices = @transform_5, window_bounds = array<i64: 1, 256>}, {pipeline_mode = #tpu.pipeline_mode<synchronous>, transform_indices = @transform_6, window_bounds = array<i64: 1, 1>}, {transform_indices = @transform_7, window_bounds = array<i64: 8, 1>}]} {
    %c0 = arith.constant 0 : index
    %c0_0 = arith.constant 0 : index
    %0 = vector.load %arg1[%c0, %c0_0] : memref<8x32xf32, #tpu.memory_space<vmem>>, vector<8x32xf32>
    %1 = arith.truncf %0 : vector<8x32xf32> to vector<8x32xbf16>
    %c0_1 = arith.constant 0 : index
    %c0_2 = arith.constant 0 : index
    %2 = vector.load %arg2[%c0_1, %c0_2] : memref<32x256xbf16, #tpu.memory_space<vmem>>, vector<32x256xbf16>
    %cst = arith.constant dense<0.000000e+00> : vector<8x256xf32>
    %3 = tpu.matmul %1, %2, %cst {dimension_numbers = #tpu.dot_dimension_numbers<[1], [0], [0], [1], [0, 0, 1, 1], [], []>} : vector<8x32xbf16>, vector<32x256xbf16>, vector<8x256xf32> -> vector<8x256xf32>
    %c0_3 = arith.constant 0 : index
    %c0_4 = arith.constant 0 : index
    %4 = vector.load %arg3[%c0_3, %c0_4] : memref<1x256xf32, #tpu.memory_space<vmem>>, vector<1x256xf32>
    %5 = vector.broadcast %4 : vector<1x256xf32> to vector<8x256xf32>
    %6 = arith.addf %3, %5 : vector<8x256xf32>
    %7 = arith.truncf %6 : vector<8x256xf32> to vector<8x256xbf16>
    %cst_5 = arith.constant 0.000000e+00 : bf16
    %8 = vector.broadcast %cst_5 : bf16 to vector<8x256xbf16>
    %9 = arith.cmpf ogt, %7, %8 : vector<8x256xbf16>
    %cst_6 = arith.constant 0.000000e+00 : bf16
    %10 = vector.broadcast %cst_6 : bf16 to vector<8x256xbf16>
    %11 = arith.minimumf %7, %10 : vector<8x256xbf16>
    %12 = math.exp %11 : vector<8x256xbf16>
    %cst_7 = arith.constant 1.000000e+00 : bf16
    %13 = vector.broadcast %cst_7 : bf16 to vector<8x256xbf16>
    %14 = arith.subf %12, %13 : vector<8x256xbf16>
    %15 = arith.select %9, %7, %14 : vector<8x256xi1>, vector<8x256xbf16>
    %c0_8 = arith.constant 0 : index
    %c0_9 = arith.constant 0 : index
    %16 = vector.load %arg4[%c0_8, %c0_9] : memref<256x256xbf16, #tpu.memory_space<vmem>>, vector<256x256xbf16>
    %cst_10 = arith.constant dense<0.000000e+00> : vector<8x256xf32>
    %17 = tpu.matmul %15, %16, %cst_10 {dimension_numbers = #tpu.dot_dimension_numbers<[1], [0], [0], [1], [0, 0, 1, 1], [], []>} : vector<8x256xbf16>, vector<256x256xbf16>, vector<8x256xf32> -> vector<8x256xf32>
    %c0_11 = arith.constant 0 : index
    %c0_12 = arith.constant 0 : index
    %18 = vector.load %arg5[%c0_11, %c0_12] : memref<1x256xf32, #tpu.memory_space<vmem>>, vector<1x256xf32>
    %19 = vector.broadcast %18 : vector<1x256xf32> to vector<8x256xf32>
    %20 = arith.addf %17, %19 : vector<8x256xf32>
    %21 = arith.truncf %20 : vector<8x256xf32> to vector<8x256xbf16>
    %cst_13 = arith.constant 0.000000e+00 : bf16
    %22 = vector.broadcast %cst_13 : bf16 to vector<8x256xbf16>
    %23 = arith.cmpf ogt, %21, %22 : vector<8x256xbf16>
    %cst_14 = arith.constant 0.000000e+00 : bf16
    %24 = vector.broadcast %cst_14 : bf16 to vector<8x256xbf16>
    %25 = arith.minimumf %21, %24 : vector<8x256xbf16>
    %26 = math.exp %25 : vector<8x256xbf16>
    %cst_15 = arith.constant 1.000000e+00 : bf16
    %27 = vector.broadcast %cst_15 : bf16 to vector<8x256xbf16>
    %28 = arith.subf %26, %27 : vector<8x256xbf16>
    %29 = arith.select %23, %21, %28 : vector<8x256xi1>, vector<8x256xbf16>
    %30 = arith.extf %29 : vector<8x256xbf16> to vector<8x256xf32>
    %c0_16 = arith.constant 0 : index
    %c0_17 = arith.constant 0 : index
    %31 = vector.load %arg6[%c0_16, %c0_17] : memref<1x256xf32, #tpu.memory_space<vmem>>, vector<1x256xf32>
    %32 = vector.broadcast %31 : vector<1x256xf32> to vector<8x256xf32>
    %33 = arith.mulf %30, %32 : vector<8x256xf32>
    %cst_18 = arith.constant dense<0.000000e+00> : vector<8xf32>
    %34 = vector.multi_reduction <add>, %33, %cst_18 [1] : vector<8x256xf32> to vector<8xf32>
    %35 = vector.shape_cast %34 : vector<8xf32> to vector<8x1xf32>
    %c0_19 = arith.constant 0 : index
    %c0_20 = arith.constant 0 : index
    %36 = vector.load %arg7[%c0_19, %c0_20] : memref<1x1xf32, #tpu.memory_space<vmem>>, vector<1x1xf32>
    %37 = vector.broadcast %36 : vector<1x1xf32> to vector<8x1xf32>
    %38 = arith.addf %35, %37 : vector<8x1xf32>
    %c0_21 = arith.constant 0 : index
    %c0_22 = arith.constant 0 : index
    %39 = vector.load %arg8[%c0_21, %c0_22] : memref<8x1xf32, #tpu.memory_space<vmem>>, vector<8x1xf32>
    tpu.vector_store %arg8[%c0_21, %c0_22], %38 {strides = array<i32>} : memref<8x1xf32, #tpu.memory_space<vmem>>, vector<8x1xf32>,
    return
  }
  func.func @transform_0(%arg0: i32) -> (i32, i32) {
    %c0_i32 = arith.constant 0 : i32
    %c0_i32_0 = arith.constant 0 : i32
    return %arg0, %c0_i32 : i32, i32
  }
  func.func @transform_1(%arg0: i32) -> (i32, i32) {
    %c0_i32 = arith.constant 0 : i32
    %c0_i32_0 = arith.constant 0 : i32
    %c0_i32_1 = arith.constant 0 : i32
    return %c0_i32, %c0_i32_0 : i32, i32
  }
  func.func @transform_2(%arg0: i32) -> (i32, i32) {
    %c0_i32 = arith.constant 0 : i32
    %c0_i32_0 = arith.constant 0 : i32
    %c0_i32_1 = arith.constant 0 : i32
    return %c0_i32, %c0_i32_0 : i32, i32
  }
  func.func @transform_3(%arg0: i32) -> (i32, i32) {
    %c0_i32 = arith.constant 0 : i32
    %c0_i32_0 = arith.constant 0 : i32
    %c0_i32_1 = arith.constant 0 : i32
    return %c0_i32, %c0_i32_0 : i32, i32
  }
  func.func @transform_4(%arg0: i32) -> (i32, i32) {
    %c0_i32 = arith.constant 0 : i32
    %c0_i32_0 = arith.constant 0 : i32
    %c0_i32_1 = arith.constant 0 : i32
    return %c0_i32, %c0_i32_0 : i32, i32
  }
  func.func @transform_5(%arg0: i32) -> (i32, i32) {
    %c0_i32 = arith.constant 0 : i32
    %c0_i32_0 = arith.constant 0 : i32
    %c0_i32_1 = arith.constant 0 : i32
    return %c0_i32, %c0_i32_0 : i32, i32
  }
  func.func @transform_6(%arg0: i32) -> (i32, i32) {
    %c0_i32 = arith.constant 0 : i32
    %c0_i32_0 = arith.constant 0 : i32
    %c0_i32_1 = arith.constant 0 : i32
    return %c0_i32, %c0_i32_0 : i32, i32
  }
  func.func @transform_7(%arg0: i32) -> (i32, i32) {
    %c0_i32 = arith.constant 0 : i32
    %c0_i32_0 = arith.constant 0 : i32
    return %arg0, %c0_i32 : i32, i32
  }
}

</mosaic_0001>

<bundles_post_ra>
// kernel: tpu_custom_call.1
= control target key start
LH: loop header
LB: loop body
LE: loop exit
PB: predicated region body
PF: predicated region fallthrough
CT: control target
= control target key end

     0   :  { %s750_s0 = inlined_call_operand.hbm [shape: f32[8,32], index: 0, kind: input, shape index: {}]   ;;  %s751_s1 = inlined_call_operand.hbm [shape: bf16[32,256], index: 1, kind: input, shape index: {}]   ;;  %s752_s2 = inlined_call_operand.vmem [shape: f32[1,256], index: 2, kind: input, shape index: {}]   ;;  %s753_s3 = inlined_call_operand.hbm [shape: bf16[256,256], index: 3, kind: input, shape index: {}]   ;;  %s754_s4 = inlined_call_operand.vmem [shape: f32[1,256], index: 4, kind: input, shape index: {}]   ;;  %s755_s5 = inlined_call_operand.vmem [shape: f32[1,256], index: 5, kind: input, shape index: {}]   ;;  %s756_s6 = inlined_call_operand.<no memory space> [shape: f32[1,1], index: 6, kind: input, shape index: {}]   ;;  %s757_s7 = inlined_call_operand.vmem [shape: f32[8,1], index: 7, kind: output, shape index: {}]  }
   0x1   :  { %v12_v0 = vstv %s756_s6 }
   0x2   :  { %13 = vst [vmem:[#allocation2] sm:$0x1] %v12_v0 }
   0x3   :  { %14 = vsyncpa [#allocation4], 0 }
   0x4   :  { %15 = vsyncpa [#allocation6], 0  ;;  %s641_s26 = smov [#allocation5]   ;;  %s571_s30 = scalar_lea.hbm %s751_s1, 512 }
   0x5   :  { %s31_s27 = sshll.u32 %s641_s26, 4  ;;  %p572_p0 = scmp.ne.s32.totalorder %s751_s1, %s571_s30  ;;  %s32_s27 = int_to_ptr.vmem [resolvable:$true] %s31_s27 }
   0x6   :  { %p575_p1 = scmp.lt.u32.totalorder %s571_s30, %s751_s1 }
   0x8   :  { %p577_p2 = pnand %p575_p1, %p572_p0 }
   0xa   :  { %580 = shalt.err (!%p577_p2)
}
   0xb   :  { %s581_s6 = scalar_lea.vmem %s32_s27, 512  ;;  %p586_p4 = scmp.lt.s32.totalorder %s32_s27, %s32_s27 }
   0xc   :  { %p582_p3 = scmp.ne.s32.totalorder %s32_s27, %s581_s6  ;;  %p587_p5 = scmp.lt.s32.totalorder %s581_s6, %s581_s6 }
   0xe   :  { %p588_p6 = por %p587_p5, %p586_p4 }
  0x10   :  { %p589_p7 = pnand %p588_p6, %p582_p3 }
  0x12   :  { %592 = shalt.err (!%p589_p7)
}
  0x13   :  { %s642_s12 = smov 128   ;;  %s643_s13 = smov 8  }
  0x14   :  { %37 = dma.hbm_to_vmem [thread:$0]  %s751_s1, 512, %s32_s27, [#allocation6], %s642_s12, %s642_s12, %s643_s13  }
  0x15   :  { %s644_s16 = smov [#allocation3]   ;;  %s645_s18 = smov [#allocation7]  }
  0x16   :  { %s22_s17 = sshll.u32 %s644_s16, 4  ;;  %s45_s19 = sshll.u32 %s645_s18, 4  ;;  %s23_s17 = int_to_ptr.vmem [resolvable:$true] %s22_s17  ;;  %s46_s19 = int_to_ptr.vmem [resolvable:$true] %s45_s19 }
  0x17   :  { %s593_s22 = scalar_lea.hbm %s750_s0, 128 }
  0x18   :  { %p594_p8 = scmp.ne.s32.totalorder %s750_s0, %s593_s22  ;;  %p597_p9 = scmp.lt.u32.totalorder %s593_s22, %s750_s0 }
  0x1a   :  { %p599_p10 = pnand %p597_p9, %p594_p8 }
  0x1c   :  { %602 = shalt.err (!%p599_p10)
}
  0x1d   :  { %s603_s1 = scalar_lea.vmem %s23_s17, 128  ;;  %p608_p12 = scmp.lt.s32.totalorder %s23_s17, %s23_s17 }
  0x1e   :  { %p604_p11 = scmp.ne.s32.totalorder %s23_s17, %s603_s1  ;;  %p609_p13 = scmp.lt.s32.totalorder %s603_s1, %s603_s1 }
  0x20   :  { %p610_p0 = por %p609_p13, %p608_p12 }
  0x22   :  { %p611_p1 = pnand %p610_p0, %p604_p11 }
  0x24   :  { %614 = shalt.err (!%p611_p1)
}
  0x25   :  { %25 = dma.hbm_to_vmem [thread:$0]  %s750_s0, 128, %s23_s17, [#allocation4]  }
  0x26   :  { %s615_s8 = scalar_lea.hbm %s753_s3, 4096 }
  0x27   :  { %p616_p2 = scmp.ne.s32.totalorder %s753_s3, %s615_s8  ;;  %p619_p3 = scmp.lt.u32.totalorder %s615_s8, %s753_s3 }
  0x29   :  { %p621_p4 = pnand %p619_p3, %p616_p2 }
  0x2b   :  { %624 = shalt.err (!%p621_p4)
}
  0x2c   :  { %s625_s14 = scalar_lea.vmem %s46_s19, 4096  ;;  %p630_p6 = scmp.lt.s32.totalorder %s46_s19, %s46_s19 }
  0x2d   :  { %p626_p5 = scmp.ne.s32.totalorder %s46_s19, %s625_s14  ;;  %p631_p7 = scmp.lt.s32.totalorder %s625_s14, %s625_s14 }
  0x2f   :  { %p632_p8 = por %p631_p7, %p630_p6 }
  0x31   :  { %p633_p9 = pnand %p632_p8, %p626_p5 }
  0x33   :  { %636 = shalt.err (!%p633_p9)
}
  0x34   :  { %51 = dma.hbm_to_vmem [thread:$0]  %s753_s3, 4096, %s46_s19, [#allocation6], %s642_s12, %s642_s12, %s643_s13  }
  0x35   :  { %637 = dma.done.wait [#allocation4], 128  }
  0x36   :  { %638 = vsyncadd [#allocation4], 4294967168 }
  0x37   :  { %639 = dma.done.wait [#allocation6], 4608  }
  0x38   :  { %640 = vsyncadd [#allocation6], 4294962688  ;;  %v646_v1 = vmov 0   ;;  %v509_v2 = vld [vmem:[#allocation5 + $0x4] ss:$8 sps:$4 sm:$0xff]   ;;  %v69_v6 = vld [vmem:[#allocation3] sm:$0xff]  ;;  %v77_v40 = vlaneseq }
  0x39   :  { %143 = vmatprep.mubr.bf16.mxu0 %v646_v1  ;;  %v511_v3 = vld [vmem:[#allocation5] ss:$8 sps:$4 sm:$0xff]   ;;  %111 = vmatprep.subr.bf16.mxu0 %v509_v2  ;;  %v512_v4 = vld [vmem:[#allocation5 + $0x14] ss:$8 sps:$4 sm:$0xff]   ;;  %v514_v5 = vld [vmem:[#allocation5 + $0x10] ss:$8 sps:$4 sm:$0xff]   ;;  %v70_v10 = vpack.c.bf16 %v69_v6, %v69_v6 }
  0x3a   :  { %112 = vmatpush1.bf16.msra.mxu0 %v511_v3  ;;  %v515_v7 = vld [vmem:[#allocation7 + $0x4] ss:$8 sps:$4 sm:$0xff]   ;;  %v517_v8 = vld [vmem:[#allocation7] ss:$8 sps:$4 sm:$0xff]   ;;  %v518_v9 = vld [vmem:[#allocation7 + $0x14] ss:$8 sps:$4 sm:$0xff]  }
  0x3b   :  { %113 = vmatprep.subr.bf16.mxu0 %v512_v4  ;;  %372 = vmatprep.subr.bf16.mxu1 %v515_v7  ;;  %v520_v11 = vld [vmem:[#allocation7 + $0x10] ss:$8 sps:$4 sm:$0xff]   ;;  %vm107_vm0 = vcmask 261120   ;;  %v521_v12 = vld [vmem:[#allocation7 + $0x24] ss:$8 sps:$4 sm:$0xff]   ;;  %v78_v41 = vshrl.u32 %v77_v40, 7 }
  0x3c   :  { %373 = vmatpush1.bf16.msra.mxu1 %v517_v8  ;;  %v523_v13 = vld [vmem:[#allocation7 + $0x20] ss:$8 sps:$4 sm:$0xff]   ;;  %v524_v14 = vld [vmem:[#allocation7 + $0x34] ss:$8 sps:$4 sm:$0xff]   ;;  %v526_v15 = vld [vmem:[#allocation7 + $0x30] ss:$8 sps:$4 sm:$0xff]  }
  0x3d   :  { %374 = vmatprep.subr.bf16.mxu1 %v518_v9  ;;  %v527_v16 = vld [vmem:[#allocation7 + $0x44] ss:$8 sps:$4 sm:$0xff]   ;;  %v529_v17 = vld [vmem:[#allocation7 + $0x40] ss:$8 sps:$4 sm:$0xff]   ;;  %v530_v18 = vld [vmem:[#allocation7 + $0x54] ss:$8 sps:$4 sm:$0xff]  }
  0x3e   :  { %114 = vmatpush1.bf16.msra.mxu0 %v514_v5  ;;  %v532_v19 = vld [vmem:[#allocation7 + $0x50] ss:$8 sps:$4 sm:$0xff]   ;;  %v533_v20 = vld [vmem:[#allocation7 + $0x64] ss:$8 sps:$4 sm:$0xff]   ;;  %v535_v21 = vld [vmem:[#allocation7 + $0x60] ss:$8 sps:$4 sm:$0xff]  }
  0x3f   :  { %v536_v22 = vld [vmem:[#allocation7 + $0x74] ss:$8 sps:$4 sm:$0xff]   ;;  %v538_v23 = vld [vmem:[#allocation7 + $0x70] ss:$8 sps:$4 sm:$0xff]   ;;  %v539_v24 = vld [vmem:[#allocation7 + $0x84] ss:$8 sps:$4 sm:$0xff]  }
  0x40   :  { %375 = vmatpush1.bf16.msra.mxu1 %v520_v11  ;;  %v541_v25 = vld [vmem:[#allocation7 + $0x80] ss:$8 sps:$4 sm:$0xff]   ;;  %v542_v26 = vld [vmem:[#allocation7 + $0x94] ss:$8 sps:$4 sm:$0xff]   ;;  %v544_v27 = vld [vmem:[#allocation7 + $0x90] ss:$8 sps:$4 sm:$0xff]  }
  0x41   :  { %468 = vmatmul.mubr.msk.bf16.vlgmr.msra.gmra.mrb[0].mxu0 %vm107_vm0, %v70_v10  ;;  %376 = vmatprep.subr.bf16.mxu1 %v521_v12  ;;  %v545_v28 = vld [vmem:[#allocation7 + $0xa4] ss:$8 sps:$4 sm:$0xff]   ;;  %v547_v29 = vld [vmem:[#allocation7 + $0xa0] ss:$8 sps:$4 sm:$0xff]   ;;  %v548_v30 = vld [vmem:[#allocation7 + $0xb4] ss:$8 sps:$4 sm:$0xff]  }
  0x42   :  { %v550_v31 = vld [vmem:[#allocation7 + $0xb0] ss:$8 sps:$4 sm:$0xff]   ;;  %v551_v32 = vld [vmem:[#allocation7 + $0xc4] ss:$8 sps:$4 sm:$0xff]   ;;  %v553_v33 = vld [vmem:[#allocation7 + $0xc0] ss:$8 sps:$4 sm:$0xff]  }
  0x43   :  { %v554_v34 = vld [vmem:[#allocation7 + $0xd4] ss:$8 sps:$4 sm:$0xff]   ;;  %v556_v35 = vld [vmem:[#allocation7 + $0xd0] ss:$8 sps:$4 sm:$0xff]   ;;  %v557_v36 = vld [vmem:[#allocation7 + $0xe4] ss:$8 sps:$4 sm:$0xff]  }
  0x44   :  { %377 = vmatpush1.bf16.msra.mxu1 %v523_v13  ;;  %v559_v37 = vld [vmem:[#allocation7 + $0xe0] ss:$8 sps:$4 sm:$0xff]   ;;  %v560_v38 = vld [vmem:[#allocation7 + $0xf4] ss:$8 sps:$4 sm:$0xff]   ;;  %v562_v39 = vld [vmem:[#allocation7 + $0xf0] ss:$8 sps:$4 sm:$0xff]  }
  0x45   :  { %378 = vmatprep.subr.bf16.mxu1 %v524_v14  ;;  %v79_v42 = vsub.s32 0, %v78_v41  ;;  %v75_v43 = vld [vmem:[%s752_s2] sm:$0x3]  ;;  %v83_v44 = vsub.s32 1, %v78_v41  ;;  %v647_v61 = vmov 1065369472  }
  0x46   :  { %v200_v3 = vld [vmem:[%s754_s4] sm:$0x3]  ;;  %vm456_vm5 = vcmask 7168  }
  0x47   :  { %v80_v45 = vrot.slane %v75_v43, %v79_v42  ;;  %v84_v46 = vrot.slane %v75_v43, %v83_v44  ;;  %v205_v4 = vrot.slane %v200_v3, %v79_v42  ;;  %v209_v5 = vrot.slane %v200_v3, %v83_v44 }
  0x48   :  { %379 = vmatpush1.bf16.msra.mxu1 %v526_v15 }
  0x49   :  { %380 = vmatprep.subr.bf16.mxu1 %v527_v16 }
  0x4c   :  { %381 = vmatpush1.bf16.msra.mxu1 %v529_v17 }
  0x4d   :  { %382 = vmatprep.subr.bf16.mxu1 %v530_v18  ;;  %v431_v18 = vld [vmem:[%s755_s5] sm:$0x3] }
  0x50   :  { %383 = vmatpush1.bf16.msra.mxu1 %v532_v19 }
  0x51   :  { %384 = vmatprep.subr.bf16.mxu1 %v533_v20 }
  0x54   :  { %385 = vmatpush1.bf16.msra.mxu1 %v535_v21 }
  0x55   :  { %386 = vmatprep.subr.bf16.mxu1 %v536_v22 }
  0x58   :  { %387 = vmatpush1.bf16.msra.mxu1 %v538_v23  ;;  %v436_v23 = vrot.slane %v431_v18, %v79_v42 }
  0x59   :  { %388 = vmatprep.subr.bf16.mxu1 %v539_v24 }
  0x5c   :  { %389 = vmatpush1.bf16.msra.mxu1 %v541_v25  ;;  %v440_v25 = vrot.slane %v431_v18, %v83_v44 }
  0x5d   :  { %390 = vmatprep.subr.bf16.mxu1 %v542_v26 }
  0x60   :  { %391 = vmatpush1.bf16.msra.mxu1 %v544_v27 }
  0x61   :  { %392 = vmatprep.subr.bf16.mxu1 %v545_v28 }
  0x64   :  { %393 = vmatpush1.bf16.msra.mxu1 %v547_v29 }
  0x65   :  { %394 = vmatprep.subr.bf16.mxu1 %v548_v30 }
  0x68   :  { %395 = vmatpush1.bf16.msra.mxu1 %v550_v31  ;;  %v501_v31 = vld [vmem:[#allocation2] ss:$0 sm:$0xff] }
  0x69   :  { %396 = vmatprep.subr.bf16.mxu1 %v551_v32 }
  0x6c   :  { %397 = vmatpush1.bf16.msra.mxu1 %v553_v33 }
  0x6d   :  { %398 = vmatprep.subr.bf16.mxu1 %v554_v34 }
  0x70   :  { %399 = vmatpush1.bf16.msra.mxu1 %v556_v35 }
  0x71   :  { %400 = vmatprep.subr.bf16.mxu1 %v557_v36 }
  0x74   :  { %401 = vmatpush1.bf16.msra.mxu1 %v559_v37 }
  0x75   :  { %402 = vmatprep.subr.bf16.mxu1 %v560_v38 }
  0x78   :  { %403 = vmatpush1.bf16.msra.mxu1 %v562_v39 }
 0x114   :  { %v145_v47 = vpop.f32.mrb[0].mxu0 }
 0x115   :  { %v146_v48 = vadd.f32 %v145_v47, %v80_v45  ;;  %v147_v49 = vpop.f32.mrb[1].mxu0 }
 0x116   :  { %v148_v50 = vadd.f32 %v147_v49, %v84_v46  ;;  %v149_v51 = vpop.f32.mrb[2].mxu0 }
 0x117   :  { %v152_v52 = vpack.c.bf16 %v146_v48, %v146_v48  ;;  %v150_v53 = vpop.f32.mrb[3].mxu0 }
 0x118   :  { %v153_v54 = vpack.c.bf16 %v148_v50, %v148_v50 }
 0x119   :  { %v156_v55 = vmin.bf16 %v646_v1, %v152_v52  ;;  %vm154_vm2 = vcmp.gt.bf16.partialorder %v152_v52, 0 }
 0x11a   :  { %v157_v56 = vmin.bf16 %v646_v1, %v153_v54  ;;  %vm155_vm1 = vcmp.gt.bf16.partialorder %v153_v54, 0 }
 0x11b   :  { %v159_v57 = vmul.bf16 1069105081, %v156_v55 }
 0x11c   :  { %v162_v58 = vmul.bf16 1069105081, %v157_v56 }
 0x11d   :  { %563 = vpow.bf16 %v159_v57 }
 0x11e   :  { %565 = vpow.bf16 %v162_v58 }
 0x128   :  { %v564_v59 = vpop.eup %563 }
 0x129   :  { %v566_v60 = vpop.eup %565  ;;  %v164_v62 = vsub.bf16 %v564_v59, %v647_v61 }
 0x12a   :  { %v165_v63 = vsub.bf16 %v566_v60, %v647_v61 }
 0x12b   :  { %v166_v2 = vsel %vm154_vm2, %v152_v52, %v164_v62 }
 0x12c   :  { %v167_v0 = vsel %vm155_vm1, %v153_v54, %v165_v63 }
 0x12d   :  { %404 = vmatprep.mubr.bf16.mxu1 %v167_v0 }
 0x12e   :  { %405 = vmatmul.mubr.bf16.vlgmr.msra.gmra.mrb[0].mxu1 %v166_v2 }
 0x201   :  { %v406_v6 = vpop.f32.mrb[0].mxu1 }
 0x202   :  { %v407_v7 = vadd.f32 %v406_v6, %v205_v4  ;;  %v408_v8 = vpop.f32.mrb[1].mxu1 }
 0x203   :  { %v409_v9 = vadd.f32 %v408_v8, %v209_v5  ;;  %v410_v10 = vpop.f32.mrb[2].mxu1 }
 0x204   :  { %v413_v11 = vpack.c.bf16 %v407_v7, %v407_v7  ;;  %v411_v12 = vpop.f32.mrb[3].mxu1 }
 0x205   :  { %v414_v13 = vpack.c.bf16 %v409_v9, %v409_v9 }
 0x206   :  { %v417_v14 = vmin.bf16 %v646_v1, %v413_v11  ;;  %vm415_vm3 = vcmp.gt.bf16.partialorder %v413_v11, 0 }
 0x207   :  { %v418_v15 = vmin.bf16 %v646_v1, %v414_v13  ;;  %vm416_vm4 = vcmp.gt.bf16.partialorder %v414_v13, 0 }
 0x208   :  { %v420_v16 = vmul.bf16 1069105081, %v417_v14 }
 0x209   :  { %v423_v17 = vmul.bf16 1069105081, %v418_v15 }
 0x20a   :  { %567 = vpow.bf16 %v420_v16 }
 0x20b   :  { %569 = vpow.bf16 %v423_v17 }
 0x215   :  { %v568_v19 = vpop.eup %567 }
 0x216   :  { %v570_v20 = vpop.eup %569  ;;  %v425_v21 = vsub.bf16 %v568_v19, %v647_v61 }
 0x217   :  { %v426_v22 = vsub.bf16 %v570_v20, %v647_v61 }
 0x218   :  { %v427_v24 = vsel %vm415_vm3, %v413_v11, %v425_v21 }
 0x219   :  { %v428_v26 = vsel %vm416_vm4, %v414_v13, %v426_v22  ;;  %v429_v27 = vunpack.c.l.bf16 %v427_v24 }
 0x21a   :  { %v430_v1 = vunpack.c.l.bf16 %v428_v26 }
 0x21b   :  { %v443_v28 = vmul.f32 %v436_v23, %v429_v27 }
 0x21c   :  { %v444_v29 = vmul.f32 %v440_v25, %v430_v1 }
 0x21e   :  { %v445_v30 = vadd.f32 %v444_v29, %v443_v28 }
 0x220   :  { %446 = vadd.xlane.f32.xlu0 %v445_v30 }
 0x2ad   :  { %v447_v32 = vpop.xlane.xlu0 %446 }
 0x2ae   :  { %v455_v33 = vadd.f32 %v501_v31, %v447_v32 }
 0x2b0   :  { %457 = vst.msk [vmem:[%s757_s7] sm:$0xff] %vm456_vm5, %v455_v33 }
 0x2b1   :  { %462 = vsyncpa [#allocation4], 1 }
 0x2b2   :  { %463 = vsyncpa [#allocation6], 1 }

</bundles_post_ra>
